<compile_context>
chip_gen: v6e
topology: v6e:2x2x1
jax: 0.10.0
libtpu: 0.0.40
codegen_flags: <defaults>
</compile_context>

<pallas_src>
import jax
import jax.numpy as jnp
from jax.experimental import pallas as pl
from jax.experimental.pallas import tpu as pltpu


def saltbot_kernel(x_ref, p_ref, o_ref):
    # x_ref: (2, BR, 128) f32 VMEM -- two feature planes, batch on (sublane, lane).
    # p_ref: (9,)         f32 SMEM -- [w1_00, w1_01, w1_10, w1_11, b1_0, b1_1,
    #                                  w2_0, w2_1, b2]   (w1 stored as (in, out))
    # o_ref: (BR, 128)    f32 VMEM -- dense output plane.

    # Hoist all SMEM scalar reads once (JAX does not CSE repeated scalar loads).
    w00 = p_ref[0]
    w01 = p_ref[1]
    w10 = p_ref[2]
    w11 = p_ref[3]
    b0 = p_ref[4]
    b1 = p_ref[5]
    v0 = p_ref[6]
    v1 = p_ref[7]
    b2 = p_ref[8]

    x0 = x_ref[0]  # (BR, 128)
    x1 = x_ref[1]  # (BR, 128)

    # fc1 (VPU FMAs with scalar broadcasts)
    z0 = x0 * w00 + x1 * w10 + b0
    z1 = x0 * w01 + x1 * w11 + b1

    # sigmoid(z) == 0.5 * tanh(0.5 * z) + 0.5  -- EUP tanh, no vector divide.
    h0 = 0.5 * jnp.tanh(0.5 * z0) + 0.5
    h1 = 0.5 * jnp.tanh(0.5 * z1) + 0.5

    # fc2
    o_ref[...] = h0 * v0 + h1 * v1 + b2


def saltbot_forward_planar(xt, params, *, block_rows=4096):
    """Layout-native entry point.

    xt:     (2, R, 128) f32 feature-planar batch, R a multiple of block size.
    params: (9,) f32 flat parameter vector.
    Returns (R, 128) f32.
    """
    two, r_pad, lanes = xt.shape
    assert two == 2 and lanes == 128
    br = min(block_rows, r_pad)
    assert br % 8 == 0 and r_pad % br == 0, (r_pad, br)
    num_blocks = r_pad // br

    return pl.pallas_call(
        saltbot_kernel,
        out_shape=jax.ShapeDtypeStruct((r_pad, 128), jnp.float32),
        grid=(num_blocks,),
        in_specs=[
            pl.BlockSpec((2, br, 128), lambda i: (0, i, 0)),           # x planes (VMEM)
            pl.BlockSpec(memory_space=pltpu.MemorySpace.SMEM),         # params (SMEM)
        ],
        out_specs=pl.BlockSpec((br, 128), lambda i: (i, 0)),
        compiler_params=pltpu.CompilerParams(
            dimension_semantics=("parallel",),
            vmem_limit_bytes=32 * 1024 * 1024,
        ),
    )(xt, params)


def saltbot_forward(x, w1, b1, w2, b2, *, block_rows=4096):
    """x: (B, 2) f32. w1: (2,2) (in,out), b1: (2,), w2: (2,1) (in,out), b2: (1,).

    Returns (B, 1) f32, matching SaltBot.forward.
    """
    B = x.shape[0]

    # Pack all 9 parameters into one flat SMEM-resident array.
    params = jnp.concatenate([
        w1.reshape(-1), b1.reshape(-1), w2.reshape(-1), b2.reshape(-1)
    ]).astype(jnp.float32)  # (9,)

    # Batch -> (rows of 128 lanes); pad only the tail, keep rows a multiple of 8
    # (sublane tiling) and of the block size (clean grid).
    rows = -(-B // 128)                      # ceil(B / 128)
    rows8 = -(-rows // 8) * 8                # round up to sublane multiple
    br = max(8, (min(block_rows, rows8) // 8) * 8)
    r_pad = -(-rows8 // br) * br
    b_pad = r_pad * 128

    # Single tail-pad + relayout pass: (B,2) -> (2, r_pad, 128).
    xp = jnp.pad(x.astype(jnp.float32), ((0, b_pad - B), (0, 0)))
    xt = jnp.transpose(xp.reshape(r_pad, 128, 2), (2, 0, 1))

    out = saltbot_forward_planar(xt, params, block_rows=br)  # (r_pad, 128)
    return out.reshape(b_pad)[:B].reshape(B, 1)


def init_params(key):
    """Deterministic synthetic init matching SaltBot shapes.
    PyTorch stores Linear weight as (out, in); we return the (in, out) transpose."""
    k1, k2, k3, k4 = jax.random.split(key, 4)
    w1_t = jax.random.normal(k1, (2, 2), jnp.float32) * 0.5   # fc1.weight.T
    b1 = jax.random.normal(k2, (2,), jnp.float32) * 0.1       # fc1.bias
    w2_t = jax.random.normal(k3, (2, 1), jnp.float32) * 0.5   # fc2.weight.T
    b2 = jax.random.normal(k4, (1,), jnp.float32) * 0.1       # fc2.bias
    return w1_t, b1, w2_t, b2


def reference_forward(x, w1, b1, w2, b2):
    h = jax.nn.sigmoid(x @ w1 + b1)
    return h @ w2 + b2


if __name__ == "__main__":
    key = jax.random.PRNGKey(0)
    kx, kp, kx2 = jax.random.split(key, 3)
    w1, b1, w2, b2 = init_params(kp)

    # Small batch (single 8x128 block, grid=(1,)).
    batch = 8
    x = jax.random.normal(kx, (batch, 2), jnp.float32)
    out = jax.block_until_ready(saltbot_forward(x, w1, b1, w2, b2))
    ref = reference_forward(x, w1, b1, w2, b2)
    assert out.shape == (batch, 1), out.shape
    assert jnp.allclose(out, ref, atol=2e-5, rtol=1e-4), "mismatch vs reference (B=8)"

    # Ragged batch with small blocks to exercise the multi-step parallel grid
    # and the tail padding path (rows=17 -> padded to 24 -> 3 blocks of 8).
    batch2 = 2053
    x2 = jax.random.normal(kx2, (batch2, 2), jnp.float32)
    out2 = jax.block_until_ready(saltbot_forward(x2, w1, b1, w2, b2, block_rows=8))
    ref2 = reference_forward(x2, w1, b1, w2, b2)
    assert out2.shape == (batch2, 1), out2.shape
    assert jnp.allclose(out2, ref2, atol=2e-5, rtol=1e-4), "mismatch vs reference (B=2053)"

    print("KERNEL_OK")
</pallas_src>

<mosaic_0001>
module attributes {stable_mosaic.version = 11 : i64} {
  func.func @saltbot_kernel(%arg0: i32, %arg1: memref<2x8x128xf32, #tpu.memory_space<vmem>>, %arg2: memref<9xf32, #tpu.memory_space<smem>>, %arg3: memref<8x128xf32, #tpu.memory_space<vmem>>) attributes {dimension_semantics = [#tpu.dimension_semantics<parallel>], iteration_bounds = array<i64: 1>, scalar_prefetch = 0 : i64, scratch_operands = 0 : i64, tpu.core_type = #tpu.core_type<tc>, window_params = [{transform_indices = @transform_0, window_bounds = array<i64: 2, 8, 128>}, {transform_indices = @transform_1, window_bounds = array<i64: 9>}, {transform_indices = @transform_2, window_bounds = array<i64: 8, 128>}]} {
    %c0 = arith.constant 0 : index
    %0 = memref.load %arg2[%c0] : memref<9xf32, #tpu.memory_space<smem>>
    %c1 = arith.constant 1 : index
    %1 = memref.load %arg2[%c1] : memref<9xf32, #tpu.memory_space<smem>>
    %c2 = arith.constant 2 : index
    %2 = memref.load %arg2[%c2] : memref<9xf32, #tpu.memory_space<smem>>
    %c3 = arith.constant 3 : index
    %3 = memref.load %arg2[%c3] : memref<9xf32, #tpu.memory_space<smem>>
    %c4 = arith.constant 4 : index
    %4 = memref.load %arg2[%c4] : memref<9xf32, #tpu.memory_space<smem>>
    %c5 = arith.constant 5 : index
    %5 = memref.load %arg2[%c5] : memref<9xf32, #tpu.memory_space<smem>>
    %c6 = arith.constant 6 : index
    %6 = memref.load %arg2[%c6] : memref<9xf32, #tpu.memory_space<smem>>
    %c7 = arith.constant 7 : index
    %7 = memref.load %arg2[%c7] : memref<9xf32, #tpu.memory_space<smem>>
    %c8 = arith.constant 8 : index
    %8 = memref.load %arg2[%c8] : memref<9xf32, #tpu.memory_space<smem>>
    %c0_0 = arith.constant 0 : index
    %c0_1 = arith.constant 0 : index
    %c0_2 = arith.constant 0 : index
    %9 = vector.load %arg1[%c0_0, %c0_1, %c0_2] : memref<2x8x128xf32, #tpu.memory_space<vmem>>, vector<1x8x128xf32>
    %10 = vector.shape_cast %9 : vector<1x8x128xf32> to vector<8x128xf32>
    %c1_3 = arith.constant 1 : index
    %c0_4 = arith.constant 0 : index
    %c0_5 = arith.constant 0 : index
    %11 = vector.load %arg1[%c1_3, %c0_4, %c0_5] : memref<2x8x128xf32, #tpu.memory_space<vmem>>, vector<1x8x128xf32>
    %12 = vector.shape_cast %11 : vector<1x8x128xf32> to vector<8x128xf32>
    %13 = vector.broadcast %0 : f32 to vector<8x128xf32>
    %14 = arith.mulf %10, %13 : vector<8x128xf32>
    %15 = vector.broadcast %2 : f32 to vector<8x128xf32>
    %16 = arith.mulf %12, %15 : vector<8x128xf32>
    %17 = arith.addf %14, %16 : vector<8x128xf32>
    %18 = vector.broadcast %4 : f32 to vector<8x128xf32>
    %19 = arith.addf %17, %18 : vector<8x128xf32>
    %20 = vector.broadcast %1 : f32 to vector<8x128xf32>
    %21 = arith.mulf %10, %20 : vector<8x128xf32>
    %22 = vector.broadcast %3 : f32 to vector<8x128xf32>
    %23 = arith.mulf %12, %22 : vector<8x128xf32>
    %24 = arith.addf %21, %23 : vector<8x128xf32>
    %25 = vector.broadcast %5 : f32 to vector<8x128xf32>
    %26 = arith.addf %24, %25 : vector<8x128xf32>
    %cst = arith.constant 5.000000e-01 : f32
    %27 = vector.broadcast %cst : f32 to vector<8x128xf32>
    %28 = arith.mulf %27, %19 : vector<8x128xf32>
    %29 = math.tanh %28 : vector<8x128xf32>
    %cst_6 = arith.constant 5.000000e-01 : f32
    %30 = vector.broadcast %cst_6 : f32 to vector<8x128xf32>
    %31 = arith.mulf %30, %29 : vector<8x128xf32>
    %cst_7 = arith.constant 5.000000e-01 : f32
    %32 = vector.broadcast %cst_7 : f32 to vector<8x128xf32>
    %33 = arith.addf %31, %32 : vector<8x128xf32>
    %cst_8 = arith.constant 5.000000e-01 : f32
    %34 = vector.broadcast %cst_8 : f32 to vector<8x128xf32>
    %35 = arith.mulf %34, %26 : vector<8x128xf32>
    %36 = math.tanh %35 : vector<8x128xf32>
    %cst_9 = arith.constant 5.000000e-01 : f32
    %37 = vector.broadcast %cst_9 : f32 to vector<8x128xf32>
    %38 = arith.mulf %37, %36 : vector<8x128xf32>
    %cst_10 = arith.constant 5.000000e-01 : f32
    %39 = vector.broadcast %cst_10 : f32 to vector<8x128xf32>
    %40 = arith.addf %38, %39 : vector<8x128xf32>
    %41 = vector.broadcast %6 : f32 to vector<8x128xf32>
    %42 = arith.mulf %33, %41 : vector<8x128xf32>
    %43 = vector.broadcast %7 : f32 to vector<8x128xf32>
    %44 = arith.mulf %40, %43 : vector<8x128xf32>
    %45 = arith.addf %42, %44 : vector<8x128xf32>
    %46 = vector.broadcast %8 : f32 to vector<8x128xf32>
    %47 = arith.addf %45, %46 : vector<8x128xf32>
    %c0_11 = arith.constant 0 : index
    %c0_12 = arith.constant 0 : index
    %48 = vector.load %arg3[%c0_11, %c0_12] : memref<8x128xf32, #tpu.memory_space<vmem>>, vector<8x128xf32>
    tpu.vector_store %arg3[%c0_11, %c0_12], %47 {strides = array<i32>} : memref<8x128xf32, #tpu.memory_space<vmem>>, vector<8x128xf32>,
    return
  }
  func.func @transform_0(%arg0: i32) -> (i32, i32, i32) {
    %c0_i32 = arith.constant 0 : i32
    %c0_i32_0 = arith.constant 0 : i32
    %c0_i32_1 = arith.constant 0 : i32
    return %c0_i32, %arg0, %c0_i32_0 : i32, i32, i32
  }
  func.func @transform_1(%arg0: i32) -> i32 {
    %c0_i32 = arith.constant 0 : i32
    %c0_i32_0 = arith.constant 0 : i32
    return %c0_i32 : i32
  }
  func.func @transform_2(%arg0: i32) -> (i32, i32) {
    %c0_i32 = arith.constant 0 : i32
    %c0_i32_0 = arith.constant 0 : i32
    return %arg0, %c0_i32 : i32, i32
  }
}

</mosaic_0001>

<bundles_post_ra>
// kernel: tpu_custom_call.1
= control target key start
LH: loop header
LB: loop body
LE: loop exit
PB: predicated region body
PF: predicated region fallthrough
CT: control target
= control target key end

     0   :  { %7 = vsyncpa [#allocation3], 0  ;;  %s201_s0 = inlined_call_operand.hbm [shape: f32[2,8,128], index: 0, kind: input, shape index: {}]   ;;  %s202_s1 = inlined_call_operand.vmem [shape: f32[9], index: 1, kind: input, shape index: {}]   ;;  %s203_s2 = inlined_call_operand.hbm [shape: f32[8,128], index: 2, kind: output, shape index: {}]  }
   0x1   :  { %8 = vsyncpa [#allocation5], 0 }
   0x2   :  { %9 = vsyncpa [#allocation4], 0  ;;  %s172_s9 = smov [#allocation2]   ;;  %s28_s13 = sshll.u32 %s202_s1, 4  ;;  %s29_s13 = int_to_ptr.vmem [resolvable:$true] %s28_s13 }
   0x3   :  { %s15_s10 = sshll.u32 %s172_s9, 4  ;;  %s16_s10 = int_to_ptr.vmem [resolvable:$true] %s15_s10 }
   0x4   :  { %s122_s14 = scalar_lea.vmem %s16_s10, 256  ;;  %p127_p1 = scmp.lt.s32.totalorder %s16_s10, %s16_s10 }
   0x5   :  { %p123_p0 = scmp.ne.s32.totalorder %s16_s10, %s122_s14  ;;  %p128_p2 = scmp.lt.s32.totalorder %s122_s14, %s122_s14 }
   0x7   :  { %p129_p3 = por %p128_p2, %p127_p1 }
   0x9   :  { %p130_p4 = pnand %p129_p3, %p123_p0 }
   0xb   :  { %133 = shalt.err (!%p130_p4)
}
   0xc   :  { %s173_s15 = smov 128   ;;  %s174_s16 = smov 8  }
   0xd   :  { %21 = dma.hbm_to_vmem [thread:$0]  %s201_s0, 256, %s16_s10, [#allocation3], %s173_s15, %s173_s15, %s174_s16  }
   0xe   :  { %s134_s19 = scalar_lea.vmem %s29_s13, 16  ;;  %p139_p6 = scmp.lt.s32.totalorder %s29_s13, %s29_s13 }
   0xf   :  { %p135_p5 = scmp.ne.s32.totalorder %s29_s13, %s134_s19  ;;  %p140_p7 = scmp.lt.s32.totalorder %s134_s19, %s134_s19 }
  0x11   :  { %p141_p8 = por %p140_p7, %p139_p6 }
  0x13   :  { %p142_p9 = pnand %p141_p8, %p135_p5 }
  0x15   :  { %145 = shalt.err (!%p142_p9)
}
  0x16   :  { %s175_s1 = smov [#allocation6]  }
  0x17   :  { %31 = dma.vmem_to_smem %s29_s13, 16, %s175_s1, [#allocation5]  }
  0x18   :  { %166 = dma.done.wait [#allocation3], 256  }
  0x19   :  { %167 = vsyncadd [#allocation3], 4294967040 }
  0x1a   :  { %168 = dma.done.wait [#allocation5], 16  }
  0x1b   :  { %169 = vsyncadd [#allocation5], 4294967280 }
  0x1c   :  { %38 = sfence }
  0x1d   :  { %s39_s20 = sld [smem:[#allocation6]]  ;;  %v48_v0 = vld [vmem:[#allocation2] sm:$0xff]  ;;  %v50_v1 = vld [vmem:[#allocation2 + $0x8] sm:$0xff]  ;;  %s176_s28 = smov [#allocation7]  }
  0x1e   :  { %s97_s21 = sld [smem:[#allocation6 + $0x1]]  ;;  %s87_s29 = sshll.u32 %s176_s28, 4  ;;  %s88_s29 = int_to_ptr.vmem [resolvable:$true] %s87_s29 }
  0x1f   :  { %s98_s22 = sld [smem:[#allocation6 + $0x2]]  ;;  %s146_s30 = scalar_lea.vmem %s88_s29, 128 }
  0x20   :  { %s99_s23 = sld [smem:[#allocation6 + $0x3]]  ;;  %p147_p10 = scmp.ne.s32.totalorder %s88_s29, %s146_s30 }
  0x21   :  { %s100_s0 = sld [smem:[#allocation6 + $0x4]]  ;;  %p151_p11 = scmp.lt.s32.totalorder %s88_s29, %s88_s29 }
  0x22   :  { %s101_s24 = sld [smem:[#allocation6 + $0x5]]  ;;  %p152_p12 = scmp.lt.s32.totalorder %s146_s30, %s146_s30 }
  0x23   :  { %v51_v2 = vstv %s39_s20  ;;  %s102_s25 = sld [smem:[#allocation6 + $0x6]] }
  0x24   :  { %v52_v3 = vmul.f32 %v51_v2, %v48_v0  ;;  %v58_v4 = vstv %s97_s21  ;;  %s103_s26 = sld [smem:[#allocation6 + $0x7]]  ;;  %p153_p13 = por %p152_p12, %p151_p11 }
  0x25   :  { %v53_v5 = vstv %s98_s22  ;;  %v59_v6 = vmul.f32 %v58_v4, %v48_v0  ;;  %s104_s27 = sld [smem:[#allocation6 + $0x8]] }
  0x26   :  { %v54_v7 = vmul.f32 %v53_v5, %v50_v1  ;;  %v60_v8 = vstv %s99_s23  ;;  %p154_p0 = pnand %p153_p13, %p147_p10 }
  0x27   :  { %v56_v9 = vstv %s100_s0  ;;  %v61_v10 = vmul.f32 %v60_v8, %v50_v1 }
  0x28   :  { %v55_v11 = vadd.f32 %v54_v7, %v52_v3  ;;  %v63_v12 = vstv %s101_s24 }
  0x29   :  { %v62_v13 = vadd.f32 %v61_v10, %v59_v6  ;;  %v73_v22 = vstv %s102_s25 }
  0x2a   :  { %v57_v14 = vadd.f32 %v56_v9, %v55_v11  ;;  %v75_v24 = vstv %s103_s26 }
  0x2b   :  { %v64_v15 = vadd.f32 %v63_v12, %v62_v13  ;;  %v78_v28 = vstv %s104_s27 }
  0x2c   :  { %v65_v16 = vmul.f32 0.5, %v57_v14 }
  0x2d   :  { %v69_v17 = vmul.f32 0.5, %v64_v15 }
  0x2e   :  { %110 = vtanh.f32 %v65_v16 }
  0x2f   :  { %112 = vtanh.f32 %v69_v17 }
  0x3b   :  { %v111_v18 = vpop.eup %110 }
  0x3c   :  { %v113_v19 = vpop.eup %112  ;;  %v67_v20 = vmul.f32 0.5, %v111_v18 }
  0x3d   :  { %v71_v21 = vmul.f32 0.5, %v113_v19 }
  0x3e   :  { %v68_v23 = vadd.f32 0.5, %v67_v20 }
  0x3f   :  { %v72_v25 = vadd.f32 0.5, %v71_v21 }
  0x40   :  { %v74_v26 = vmul.f32 %v73_v22, %v68_v23 }
  0x41   :  { %v76_v27 = vmul.f32 %v75_v24, %v72_v25 }
  0x43   :  { %v77_v29 = vadd.f32 %v76_v27, %v74_v26 }
  0x45   :  { %v79_v30 = vadd.f32 %v78_v28, %v77_v29 }
  0x47   :  { %80 = vst [vmem:[#allocation7] sm:$0xff] %v79_v30 }
  0x48   :  { %157 = shalt.err (!%p154_p0)
}
  0x49   :  { %90 = dma.vmem_to_hbm [thread:$0]  %s88_s29, 128, %s203_s2, [#allocation4]  }
  0x4a   :  { %170 = dma.done.wait [#allocation4], 128  }
  0x4b   :  { %171 = vsyncadd [#allocation4], 4294967168 }
  0x4c   :  { %94 = vsyncpa [#allocation3], 1 }
  0x4d   :  { %95 = vsyncpa [#allocation4], 1 }
  0x4e   :  { %96 = vsyncpa [#allocation5], 1 }

</bundles_post_ra>
